<compile_context>
chip_gen: v5e
topology: v5e:2x2
jax: 0.10.0
libtpu: 0.0.40
codegen_flags: <defaults>
</compile_context>

<pallas_src>
import jax
import jax.numpy as jnp
from jax.experimental import pallas as pl
from jax.experimental.pallas import tpu as pltpu

EPS = 1e-5


# ----------------------------------------------------------------------------
# Kernel: one batch tile; weights/params are VMEM-resident across grid steps.
# ----------------------------------------------------------------------------
def _mlp_kernel(x_ref,
                w1_ref, b1_ref,        # input layer (bias f32)
                w2_ref, hb_ref,        # hidden Linear (BN1 folded) + [b2',s2,c2]
                woT_ref, boT_ref,      # output layer, transposed
                o_ref):                # out^T  (OUT_SUB, TILE_B)
    wdt = w1_ref.dtype
    x = x_ref[...].astype(wdt)         # cast in-kernel; x stays f32 in HBM

    # input_layer -> ReLU   (BN1 is folded into w2/b2' by prepare_params)
    h = jnp.dot(x, w1_ref[...], preferred_element_type=jnp.float32) + b1_ref[...]
    h = jnp.maximum(h, 0.0)

    # hidden block: Linear(+BN1 folded) -> ReLU -> BN2 affine -> outer ReLU
    hb = hb_ref[...]                   # rows: [b2', s2, c2]
    z = jnp.dot(h.astype(wdt), w2_ref[...],
                preferred_element_type=jnp.float32) + hb[0:1, :]
    z = jnp.maximum(z, 0.0)
    z = z * hb[1:2, :] + hb[2:3, :]
    z = jnp.maximum(z, 0.0)

    # output_layer, transposed: out^T = Wout^T @ z^T  -> (OUT_SUB, TILE_B)
    o_t = jax.lax.dot_general(
        woT_ref[...], z.astype(wdt),
        dimension_numbers=(((1,), (1,)), ((), ())),
        preferred_element_type=jnp.float32)
    o_ref[...] = (o_t + boT_ref[...]).astype(o_ref.dtype)


# ----------------------------------------------------------------------------
# One-time parameter prep: fold BN, pad, cast.  Out of the hot path.
# ----------------------------------------------------------------------------
def _rup(n, m):
    return ((n + m - 1) // m) * m


def _pad2(a, rows, cols):
    pr, pc = rows - a.shape[0], cols - a.shape[1]
    if pr == 0 and pc == 0:
        return a
    return jnp.pad(a, ((0, pr), (0, pc)))


def prepare_params(params, *, compute_dtype=jnp.bfloat16):
    (w1, b1, g1, be1, m1, v1,
     w2, b2, g2, be2, m2, v2,
     wo, bo) = params

    in_dim, h0 = w1.shape
    h1 = w2.shape[1]
    out_dim = wo.shape[1]

    # Fold BatchNorm (running stats) into scale/shift.
    s1 = g1 * jax.lax.rsqrt(v1 + EPS)
    c1 = be1 - m1 * s1
    s2 = g2 * jax.lax.rsqrt(v2 + EPS)
    c2 = be2 - m2 * s2
    # BN1 sits before the second Linear -> fold it into w2/b2 (in f32).
    w2f = s1.reshape(-1, 1) * w2
    b2f = c1 @ w2 + b2

    H0_P = _rup(h0, 128)
    H1_P = _rup(h1, 128)
    OUT_SUB = _rup(out_dim, 8)

    w1p = _pad2(w1, in_dim, H0_P).astype(compute_dtype)      # x keeps true in_dim
    b1p = _pad2(b1, 1, H0_P).astype(jnp.float32)
    w2p = _pad2(w2f, H0_P, H1_P).astype(compute_dtype)
    hbp = _pad2(jnp.concatenate([b2f, s2, c2], axis=0),
                3, H1_P).astype(jnp.float32)                  # [b2', s2, c2]
    woT = _pad2(wo.T, OUT_SUB, H1_P).astype(compute_dtype)    # transposed output W
    boT = _pad2(bo.T, OUT_SUB, 1).astype(jnp.float32)

    return (w1p, b1p, w2p, hbp, woT, boT, out_dim)


# ----------------------------------------------------------------------------
# Batch tiling: 16-row minimum, 128-multiples for big batches, >=2 steps when
# batch >= 256 so both v7x TensorCores get work; TILE_B always divides B_P.
# ----------------------------------------------------------------------------
def _choose_tiling(batch, max_tile_b=512):
    if batch <= 128:
        b_p = _rup(max(batch, 1), 16)
        return b_p, b_p                        # single grid step
    b_p = _rup(batch, 128)
    tile = min(max_tile_b, b_p)
    if tile == b_p and b_p >= 256:             # ensure >= 2 grid steps (v7x)
        tile = _rup((b_p + 1) // 2, 128)
    while b_p % tile != 0:                     # tile must divide padded batch
        tile -= 128
    return b_p, tile


# ----------------------------------------------------------------------------
# Forward: x (batch, in_dim) f32, prepped weights -> (batch, out_dim) f32.
# ----------------------------------------------------------------------------
def mlp_forward(x, prepped, *, max_tile_b=512):
    w1, b1, w2, hb, woT, boT, out_dim = prepped
    batch, in_dim = x.shape
    H0_P = w1.shape[1]
    H1_P = w2.shape[1]
    OUT_SUB = woT.shape[0]

    B_P, TILE_B = _choose_tiling(batch, max_tile_b)
    grid = (B_P // TILE_B,)

    const = lambda shape: pl.BlockSpec(shape, lambda i: (0, 0))
    in_specs = [
        pl.BlockSpec((TILE_B, in_dim), lambda i: (i, 0)),   # x: batch-tiled, true in_dim
        const((in_dim, H0_P)), const((1, H0_P)),
        const((H0_P, H1_P)), const((3, H1_P)),
        const((OUT_SUB, H1_P)), const((OUT_SUB, 1)),
    ]
    out_specs = pl.BlockSpec((OUT_SUB, TILE_B), lambda i: (0, i))

    operands = (x, w1, b1, w2, hb, woT, boT)
    flops = 2 * B_P * (in_dim * H0_P + H0_P * H1_P + H1_P * OUT_SUB)
    bytes_accessed = int(sum(int(a.size) * a.dtype.itemsize for a in operands)
                         + OUT_SUB * B_P * 4)
    cost = pl.CostEstimate(flops=flops, transcendentals=0,
                           bytes_accessed=bytes_accessed)

    out_t = pl.pallas_call(
        _mlp_kernel,
        out_shape=jax.ShapeDtypeStruct((OUT_SUB, B_P), jnp.float32),
        grid=grid,
        in_specs=in_specs,
        out_specs=out_specs,
        compiler_params=pltpu.CompilerParams(
            dimension_semantics=("parallel",),
            vmem_limit_bytes=32 * 1024 * 1024),
        cost_estimate=cost,
    )(*operands)

    return out_t[:out_dim, :batch].T


# ----------------------------------------------------------------------------
# Params / reference
# ----------------------------------------------------------------------------
def _uniform(key, shape, bound):
    return jax.random.uniform(key, shape, jnp.float32, -bound, bound)


def init_params(key, input_dim, hidden_units, output_dim):
    """Deterministic PyTorch-style init. Linear weights stored as [in, out]."""
    h0, h1 = hidden_units
    ks = jax.random.split(key, 6)

    bnd1 = 1.0 / jnp.sqrt(input_dim)
    w1 = _uniform(ks[0], (input_dim, h0), bnd1)
    b1 = _uniform(ks[1], (1, h0), bnd1)
    g1, be1 = jnp.ones((1, h0), jnp.float32), jnp.zeros((1, h0), jnp.float32)
    m1, v1 = jnp.zeros((1, h0), jnp.float32), jnp.ones((1, h0), jnp.float32)

    bnd2 = 1.0 / jnp.sqrt(h0)
    w2 = _uniform(ks[2], (h0, h1), bnd2)
    b2 = _uniform(ks[3], (1, h1), bnd2)
    g2, be2 = jnp.ones((1, h1), jnp.float32), jnp.zeros((1, h1), jnp.float32)
    m2, v2 = jnp.zeros((1, h1), jnp.float32), jnp.ones((1, h1), jnp.float32)

    bndo = 1.0 / jnp.sqrt(h1)
    wo = _uniform(ks[4], (h1, output_dim), bndo)
    bo = _uniform(ks[5], (1, output_dim), bndo)

    return (w1, b1, g1, be1, m1, v1,
            w2, b2, g2, be2, m2, v2,
            wo, bo)


def reference_forward(x, params):
    (w1, b1, g1, be1, m1, v1,
     w2, b2, g2, be2, m2, v2,
     wo, bo) = params
    h = jnp.maximum(x @ w1 + b1, 0.0)
    h = g1 * (h - m1) / jnp.sqrt(v1 + EPS) + be1
    z = jnp.maximum(h @ w2 + b2, 0.0)
    z = g2 * (z - m2) / jnp.sqrt(v2 + EPS) + be2
    z = jnp.maximum(z, 0.0)          # Model.forward's relu around the block
    return z @ wo + bo               # Dropout = identity (eval mode)


if __name__ == "__main__":
    input_dim = 32
    hidden_units = (64, 32)
    output_dim = 1

    key = jax.random.PRNGKey(0)
    kx, kp, kx2 = jax.random.split(key, 3)
    params = init_params(kp, input_dim, hidden_units, output_dim)

    # --- small batch: f32 path (tight check of the kernel / BN-fold algebra)
    batch = 8
    x = jax.random.normal(kx, (batch, input_dim), jnp.float32)
    ref = reference_forward(x, params)

    prepped_f32 = prepare_params(params, compute_dtype=jnp.float32)
    out_f32 = jax.block_until_ready(mlp_forward(x, prepped_f32))
    assert out_f32.shape == (batch, output_dim)
    assert jnp.allclose(out_f32, ref, atol=1e-4, rtol=1e-4)

    # --- bf16 MXU path (default): looser tolerance for bf16 operands
    prepped_bf16 = prepare_params(params, compute_dtype=jnp.bfloat16)
    out_bf16 = jax.block_until_ready(mlp_forward(x, prepped_bf16))
    assert out_bf16.shape == (batch, output_dim)
    assert jnp.allclose(out_bf16, ref, atol=5e-2, rtol=5e-2)

    # --- mid-size batch: exercises 128-row tiles, 2 grid steps, partial tail
    batch2 = 200
    x2 = jax.random.normal(kx2, (batch2, input_dim), jnp.float32)
    ref2 = reference_forward(x2, params)
    out2 = jax.block_until_ready(mlp_forward(x2, prepped_bf16))
    assert out2.shape == (batch2, output_dim)
    assert jnp.allclose(out2, ref2, atol=5e-2, rtol=5e-2)

    print("KERNEL_OK")
</pallas_src>

<mosaic_0001>
module attributes {stable_mosaic.version = 11 : i64} {
  func.func @_mlp_kernel(%arg0: i32, %arg1: memref<16x32xf32, #tpu.memory_space<vmem>>, %arg2: memref<32x128xf32, #tpu.memory_space<vmem>>, %arg3: memref<1x128xf32, #tpu.memory_space<vmem>>, %arg4: memref<128x128xf32, #tpu.memory_space<vmem>>, %arg5: memref<3x128xf32, #tpu.memory_space<vmem>>, %arg6: memref<8x128xf32, #tpu.memory_space<vmem>>, %arg7: memref<8x1xf32, #tpu.memory_space<vmem>>, %arg8: memref<8x16xf32, #tpu.memory_space<vmem>>) attributes {dimension_semantics = [#tpu.dimension_semantics<parallel>], iteration_bounds = array<i64: 1>, scalar_prefetch = 0 : i64, scratch_operands = 0 : i64, tpu.core_type = #tpu.core_type<tc>, window_params = [{transform_indices = @transform_0, window_bounds = array<i64: 16, 32>}, {pipeline_mode = #tpu.pipeline_mode<synchronous>, transform_indices = @transform_1, window_bounds = array<i64: 32, 128>}, {pipeline_mode = #tpu.pipeline_mode<synchronous>, transform_indices = @transform_2, window_bounds = array<i64: 1, 128>}, {pipeline_mode = #tpu.pipeline_mode<synchronous>, transform_indices = @transform_3, window_bounds = array<i64: 128, 128>}, {pipeline_mode = #tpu.pipeline_mode<synchronous>, transform_indices = @transform_4, window_bounds = array<i64: 3, 128>}, {pipeline_mode = #tpu.pipeline_mode<synchronous>, transform_indices = @transform_5, window_bounds = array<i64: 8, 128>}, {pipeline_mode = #tpu.pipeline_mode<synchronous>, transform_indices = @transform_6, window_bounds = array<i64: 8, 1>}, {transform_indices = @transform_7, window_bounds = array<i64: 8, 16>}]} {
    %c0 = arith.constant 0 : index
    %c0_0 = arith.constant 0 : index
    %0 = vector.load %arg1[%c0, %c0_0] : memref<16x32xf32, #tpu.memory_space<vmem>>, vector<16x32xf32>
    %c0_1 = arith.constant 0 : index
    %c0_2 = arith.constant 0 : index
    %1 = vector.load %arg2[%c0_1, %c0_2] : memref<32x128xf32, #tpu.memory_space<vmem>>, vector<32x128xf32>
    %cst = arith.constant dense<0.000000e+00> : vector<16x128xf32>
    %2 = tpu.matmul %0, %1, %cst {dimension_numbers = #tpu.dot_dimension_numbers<[1], [0], [0], [1], [0, 0, 1, 1], [], []>} : vector<16x32xf32>, vector<32x128xf32>, vector<16x128xf32> -> vector<16x128xf32>
    %c0_3 = arith.constant 0 : index
    %c0_4 = arith.constant 0 : index
    %3 = vector.load %arg3[%c0_3, %c0_4] : memref<1x128xf32, #tpu.memory_space<vmem>>, vector<1x128xf32>
    %4 = vector.broadcast %3 : vector<1x128xf32> to vector<16x128xf32>
    %5 = arith.addf %2, %4 : vector<16x128xf32>
    %cst_5 = arith.constant 0.000000e+00 : f32
    %6 = vector.broadcast %cst_5 : f32 to vector<16x128xf32>
    %7 = arith.maximumf %5, %6 : vector<16x128xf32>
    %c0_6 = arith.constant 0 : index
    %c0_7 = arith.constant 0 : index
    %8 = vector.load %arg5[%c0_6, %c0_7] : memref<3x128xf32, #tpu.memory_space<vmem>>, vector<3x128xf32>
    %c0_8 = arith.constant 0 : index
    %c0_9 = arith.constant 0 : index
    %9 = vector.load %arg4[%c0_8, %c0_9] : memref<128x128xf32, #tpu.memory_space<vmem>>, vector<128x128xf32>
    %cst_10 = arith.constant dense<0.000000e+00> : vector<16x128xf32>
    %10 = tpu.matmul %7, %9, %cst_10 {dimension_numbers = #tpu.dot_dimension_numbers<[1], [0], [0], [1], [0, 0, 1, 1], [], []>} : vector<16x128xf32>, vector<128x128xf32>, vector<16x128xf32> -> vector<16x128xf32>
    %11 = vector.extract_strided_slice %8 {offsets = [0, 0], sizes = [1, 128], strides = [1, 1]} : vector<3x128xf32> to vector<1x128xf32>
    %12 = vector.broadcast %11 : vector<1x128xf32> to vector<16x128xf32>
    %13 = arith.addf %10, %12 : vector<16x128xf32>
    %cst_11 = arith.constant 0.000000e+00 : f32
    %14 = vector.broadcast %cst_11 : f32 to vector<16x128xf32>
    %15 = arith.maximumf %13, %14 : vector<16x128xf32>
    %16 = vector.extract_strided_slice %8 {offsets = [1, 0], sizes = [1, 128], strides = [1, 1]} : vector<3x128xf32> to vector<1x128xf32>
    %17 = vector.broadcast %16 : vector<1x128xf32> to vector<16x128xf32>
    %18 = arith.mulf %15, %17 : vector<16x128xf32>
    %19 = vector.extract_strided_slice %8 {offsets = [2, 0], sizes = [1, 128], strides = [1, 1]} : vector<3x128xf32> to vector<1x128xf32>
    %20 = vector.broadcast %19 : vector<1x128xf32> to vector<16x128xf32>
    %21 = arith.addf %18, %20 : vector<16x128xf32>
    %cst_12 = arith.constant 0.000000e+00 : f32
    %22 = vector.broadcast %cst_12 : f32 to vector<16x128xf32>
    %23 = arith.maximumf %21, %22 : vector<16x128xf32>
    %c0_13 = arith.constant 0 : index
    %c0_14 = arith.constant 0 : index
    %24 = vector.load %arg6[%c0_13, %c0_14] : memref<8x128xf32, #tpu.memory_space<vmem>>, vector<8x128xf32>
    %cst_15 = arith.constant dense<0.000000e+00> : vector<8x16xf32>
    %25 = tpu.matmul %24, %23, %cst_15 {dimension_numbers = #tpu.dot_dimension_numbers<[1], [1], [0], [0], [0, 0, 1, 0], [], []>} : vector<8x128xf32>, vector<16x128xf32>, vector<8x16xf32> -> vector<8x16xf32>
    %c0_16 = arith.constant 0 : index
    %c0_17 = arith.constant 0 : index
    %26 = vector.load %arg7[%c0_16, %c0_17] : memref<8x1xf32, #tpu.memory_space<vmem>>, vector<8x1xf32>
    %27 = vector.broadcast %26 : vector<8x1xf32> to vector<8x16xf32>
    %28 = arith.addf %25, %27 : vector<8x16xf32>
    %c0_18 = arith.constant 0 : index
    %c0_19 = arith.constant 0 : index
    %29 = vector.load %arg8[%c0_18, %c0_19] : memref<8x16xf32, #tpu.memory_space<vmem>>, vector<8x16xf32>
    tpu.vector_store %arg8[%c0_18, %c0_19], %28 {strides = array<i32>} : memref<8x16xf32, #tpu.memory_space<vmem>>, vector<8x16xf32>,
    return
  }
  func.func @transform_0(%arg0: i32) -> (i32, i32) {
    %c0_i32 = arith.constant 0 : i32
    %c0_i32_0 = arith.constant 0 : i32
    return %arg0, %c0_i32 : i32, i32
  }
  func.func @transform_1(%arg0: i32) -> (i32, i32) {
    %c0_i32 = arith.constant 0 : i32
    %c0_i32_0 = arith.constant 0 : i32
    %c0_i32_1 = arith.constant 0 : i32
    return %c0_i32, %c0_i32_0 : i32, i32
  }
  func.func @transform_2(%arg0: i32) -> (i32, i32) {
    %c0_i32 = arith.constant 0 : i32
    %c0_i32_0 = arith.constant 0 : i32
    %c0_i32_1 = arith.constant 0 : i32
    return %c0_i32, %c0_i32_0 : i32, i32
  }
  func.func @transform_3(%arg0: i32) -> (i32, i32) {
    %c0_i32 = arith.constant 0 : i32
    %c0_i32_0 = arith.constant 0 : i32
    %c0_i32_1 = arith.constant 0 : i32
    return %c0_i32, %c0_i32_0 : i32, i32
  }
  func.func @transform_4(%arg0: i32) -> (i32, i32) {
    %c0_i32 = arith.constant 0 : i32
    %c0_i32_0 = arith.constant 0 : i32
    %c0_i32_1 = arith.constant 0 : i32
    return %c0_i32, %c0_i32_0 : i32, i32
  }
  func.func @transform_5(%arg0: i32) -> (i32, i32) {
    %c0_i32 = arith.constant 0 : i32
    %c0_i32_0 = arith.constant 0 : i32
    %c0_i32_1 = arith.constant 0 : i32
    return %c0_i32, %c0_i32_0 : i32, i32
  }
  func.func @transform_6(%arg0: i32) -> (i32, i32) {
    %c0_i32 = arith.constant 0 : i32
    %c0_i32_0 = arith.constant 0 : i32
    %c0_i32_1 = arith.constant 0 : i32
    return %c0_i32, %c0_i32_0 : i32, i32
  }
  func.func @transform_7(%arg0: i32) -> (i32, i32) {
    %c0_i32 = arith.constant 0 : i32
    %c0_i32_0 = arith.constant 0 : i32
    return %c0_i32, %arg0 : i32, i32
  }
}

</mosaic_0001>

<bundles_post_ra>
// kernel: tpu_custom_call.1
= control target key start
LH: loop header
LB: loop body
LE: loop exit
PB: predicated region body
PF: predicated region fallthrough
CT: control target
= control target key end

     0   :  { %12 = vsyncpa [#allocation3], 0  ;;  %s460_s0 = inlined_call_operand.vmem [shape: f32[8,32], index: 0, kind: input, shape index: {}]   ;;  %s461_s1 = inlined_call_operand.hbm [shape: f32[32,128], index: 1, kind: input, shape index: {}]   ;;  %s462_s2 = inlined_call_operand.hbm [shape: f32[1,128], index: 2, kind: input, shape index: {}]   ;;  %s463_s3 = inlined_call_operand.hbm [shape: f32[128,128], index: 3, kind: input, shape index: {}]   ;;  %s464_s4 = inlined_call_operand.vmem [shape: f32[3,128], index: 4, kind: input, shape index: {}]   ;;  %s465_s5 = inlined_call_operand.hbm [shape: f32[8,128], index: 5, kind: input, shape index: {}]   ;;  %s466_s6 = inlined_call_operand.vmem [shape: f32[8,1], index: 6, kind: input, shape index: {}]   ;;  %s467_s7 = inlined_call_operand.hbm [shape: f32[8,16], index: 7, kind: output, shape index: {}]  }
   0x1   :  { %13 = vsyncpa [#allocation6], 0 }
   0x2   :  { %14 = vsyncpa [#allocation9], 0  ;;  %s36_s26 = sshll.u32 %s462_s2, 4  ;;  %s37_s26 = int_to_ptr.hbm [resolvable:$true] %s36_s26 }
   0x3   :  { %15 = vsyncpa [#allocation4], 0  ;;  %s383_s27 = smov [#allocation5]   ;;  %s22_s8 = sshll.u32 %s461_s1, 4  ;;  %s23_s8 = int_to_ptr.hbm [resolvable:$true] %s22_s8 }
   0x4   :  { %s38_s28 = sshll.u32 %s383_s27, 4  ;;  %s384_s9 = smov [#allocation2]   ;;  %s39_s28 = int_to_ptr.vmem [resolvable:$true] %s38_s28 }
   0x5   :  { %41 = dma.hbm_to_vmem [thread:$0]  %s37_s26, 16, %s39_s28, [#allocation6]  }
   0x6   :  { %s24_s10 = sshll.u32 %s384_s9, 4  ;;  %s385_s11 = smov 128   ;;  %s25_s10 = int_to_ptr.vmem [resolvable:$true] %s24_s10 }
   0x7   :  { %s386_s12 = smov 8   ;;  %s46_s2 = sshll.u32 %s463_s3, 4  ;;  %s47_s2 = int_to_ptr.hbm [resolvable:$true] %s46_s2 }
   0x8   :  { %30 = dma.hbm_to_vmem [thread:$0]  %s23_s8, 512, %s25_s10, [#allocation3], %s385_s11, %s385_s11, %s386_s12  }
   0x9   :  { %s387_s15 = smov [#allocation7]   ;;  %s62_s1 = sshll.u32 %s465_s5, 4  ;;  %s63_s1 = int_to_ptr.hbm [resolvable:$true] %s62_s1 }
   0xa   :  { %s48_s16 = sshll.u32 %s387_s15, 4  ;;  %s388_s19 = smov [#allocation8]   ;;  %s49_s16 = int_to_ptr.vmem [resolvable:$true] %s48_s16 }
   0xb   :  { %54 = dma.hbm_to_vmem [thread:$0]  %s47_s2, 2048, %s49_s16, [#allocation6], %s385_s11, %s385_s11, %s386_s12  }
   0xc   :  { %s64_s20 = sshll.u32 %s388_s19, 4  ;;  %s65_s20 = int_to_ptr.vmem [resolvable:$true] %s64_s20 }
   0xd   :  { %67 = dma.hbm_to_vmem [thread:$0]  %s63_s1, 128, %s65_s20, [#allocation9]  }
   0xe   :  { %375 = dma.done.wait [#allocation3], 512  }
   0xf   :  { %376 = vsyncadd [#allocation3], 4294966784 }
  0x10   :  { %377 = dma.done.wait [#allocation6], 2064  }
  0x11   :  { %378 = vsyncadd [#allocation6], 4294965232 }
  0x12   :  { %379 = dma.done.wait [#allocation9], 128  }
  0x13   :  { %380 = vsyncadd [#allocation9], 4294967168  ;;  %v91_v0 = vld [vmem:[#allocation2 + $0x18] sm:$0xff]  ;;  %v90_v1 = vld [vmem:[#allocation2 + $0x10] sm:$0xff]  ;;  %vm96_vm0 = vcmask 261120   ;;  %v389_v30 = vmov 0  }
  0x14   :  { %115 = vmatpush.msra.mxu0 %v91_v0  ;;  %v89_v2 = vld [vmem:[#allocation2 + $0x8] sm:$0xff]  ;;  %v144_v3 = vld [vmem:[#allocation7 + $0x78] sm:$0xff]  ;;  %v143_v4 = vld [vmem:[#allocation7 + $0x70] sm:$0xff]  ;;  %253 = vset.pattern.permute.xlu0 %v389_v30  ;;  %s215_s28 = sshll.u32 %s467_s7, 4  ;;  %vm206_vm1 = vcmask 130048   ;;  %s216_s28 = int_to_ptr.hbm [resolvable:$true] %s215_s28 }
  0x15   :  { %146 = vmatpush.msra.mxu1 %v144_v3  ;;  %v88_v5 = vld [vmem:[#allocation2] sm:$0xff]  ;;  %v142_v6 = vld [vmem:[#allocation7 + $0x68] sm:$0xff]  ;;  %229 = vmatpush.msra.mxu3 %v144_v3  ;;  %v139_v10 = vld [vmem:[#allocation7 + $0x50] sm:$0xff] }
  0x16   :  { %116 = vmatpush.msra.mxu0 %v90_v1  ;;  %v86_v7 = vld [vmem:[%s460_s0] sm:$0xff]  ;;  %v138_v11 = vld [vmem:[#allocation7 + $0x48] sm:$0xff]  ;;  %v135_v15 = vld [vmem:[#allocation7 + $0x30] sm:$0xff] }
  0x17   :  { %147 = vmatpush.msra.mxu1 %v143_v4  ;;  %v141_v8 = vld [vmem:[#allocation7 + $0x60] sm:$0xff]  ;;  %230 = vmatpush.msra.mxu3 %v143_v4  ;;  %v140_v9 = vld [vmem:[#allocation7 + $0x58] sm:$0xff]  ;;  %v134_v16 = vld [vmem:[#allocation7 + $0x28] sm:$0xff] }
  0x18   :  { %117 = vmatpush.msra.mxu0 %v89_v2  ;;  %v87_v12 = vld [vmem:[%s460_s0 + $0x8] sm:$0xff]  ;;  %v136_v14 = vld [vmem:[#allocation7 + $0x38] sm:$0xff]  ;;  %v131_v19 = vld [vmem:[#allocation7 + $0x10] sm:$0xff] }
  0x19   :  { %148 = vmatpush.msra.mxu1 %v142_v6  ;;  %231 = vmatpush.msra.mxu3 %v142_v6  ;;  %v137_v13 = vld [vmem:[#allocation7 + $0x40] sm:$0xff]  ;;  %v132_v18 = vld [vmem:[#allocation7 + $0x18] sm:$0xff]  ;;  %v130_v20 = vld [vmem:[#allocation7 + $0x8] sm:$0xff] }
  0x1a   :  { %118 = vmatpush.msra.mxu0 %v88_v5  ;;  %v133_v17 = vld [vmem:[#allocation7 + $0x20] sm:$0xff]  ;;  %v254_v22 = vld [vmem:[#allocation5] ss:$0 sm:$0xff] }
  0x1b   :  { %227 = vmatmul.msk.f32.vlgmr.msra.gmra.mxu0 %vm96_vm0, %v86_v7  ;;  %149 = vmatpush.msra.mxu1 %v141_v8  ;;  %v129_v21 = vld [vmem:[#allocation7] sm:$0xff] }
  0x1c   :  { %232 = vmatpush.msra.mxu3 %v141_v8  ;;  %v180_v29 = vld [vmem:[%s466_s6] sm:$0xff] }
  0x1d   :  { %150 = vmatpush.msra.mxu1 %v140_v9  ;;  %183 = vperm.xlu0 %253, %v180_v29   ;;  %v128_v31 = vld [vmem:[%s464_s4] sm:$0x7]  ;;  %s390_s4 = smov [#allocation10]  }
  0x1e   :  { %233 = vmatpush.msra.mxu3 %v140_v9  ;;  %v145_v32 = vperm.slane %v128_v31, 0  ;;  %v171_v37 = vperm.slane %v128_v31, 1  ;;  %v174_v42 = vperm.slane %v128_v31, 2  ;;  %v179_v47 = vld [vmem:[#allocation8] sm:$0xff]  ;;  %s213_s6 = sshll.u32 %s390_s4, 4  ;;  %s214_s6 = int_to_ptr.vmem [resolvable:$true] %s213_s6 }
  0x1f   :  { %151 = vmatpush.msra.mxu1 %v139_v10 }
  0x20   :  { %234 = vmatpush.msra.mxu3 %v139_v10 }
  0x21   :  { %152 = vmatpush.msra.mxu1 %v138_v11 }
  0x22   :  { %235 = vmatpush.msra.mxu3 %v138_v11 }
  0x23   :  { %228 = vmatmul.msk.f32.gmra.mxu0 %vm96_vm0, %v87_v12  ;;  %153 = vmatpush.msra.mxu1 %v137_v13 }
  0x24   :  { %236 = vmatpush.msra.mxu3 %v137_v13 }
  0x25   :  { %154 = vmatpush.msra.mxu1 %v136_v14 }
  0x26   :  { %237 = vmatpush.msra.mxu3 %v136_v14 }
  0x27   :  { %155 = vmatpush.msra.mxu1 %v135_v15 }
  0x28   :  { %238 = vmatpush.msra.mxu3 %v135_v15 }
  0x29   :  { %156 = vmatpush.msra.mxu1 %v134_v16 }
  0x2a   :  { %239 = vmatpush.msra.mxu3 %v134_v16 }
  0x2b   :  { %157 = vmatpush.msra.mxu1 %v133_v17 }
  0x2c   :  { %240 = vmatpush.msra.mxu3 %v133_v17 }
  0x2d   :  { %158 = vmatpush.msra.mxu1 %v132_v18 }
  0x2e   :  { %241 = vmatpush.msra.mxu3 %v132_v18 }
  0x2f   :  { %159 = vmatpush.msra.mxu1 %v131_v19 }
  0x30   :  { %242 = vmatpush.msra.mxu3 %v131_v19 }
  0x31   :  { %160 = vmatpush.msra.mxu1 %v130_v20 }
  0x32   :  { %243 = vmatpush.msra.mxu3 %v130_v20 }
  0x33   :  { %161 = vmatpush.msra.mxu1 %v129_v21 }
  0x34   :  { %244 = vmatpush.msra.mxu3 %v129_v21 }
  0x8f   :  { %v184_v48 = vpop.permute.xlu0 %183 }
  0x98   :  { %v120_v23 = vpop.f32.mrf.mxu0 }
  0x99   :  { %v121_v24 = vadd.f32 %v254_v22, %v120_v23 }
  0x9b   :  { %v126_v25 = vmax.f32 %v121_v24, 0.0 }
  0x9d   :  { %162 = vmatmul.f32.vlgmr.msra.gmra.mxu1 %v126_v25 }
  0xa0   :  { %v123_v26 = vpop.f32.mrf.mxu0 }
  0xa1   :  { %v124_v27 = vadd.f32 %v254_v22, %v123_v26 }
  0xa3   :  { %v127_v28 = vmax.f32 %v124_v27, 0.0 }
  0xa5   :  { %165 = vmatmul.f32.vlgmr.msra.gmra.mxu3 %v127_v28 }
 0x11a   :  { %v163_v33 = vpop.f32.mrf.mxu1 }
 0x11b   :  { %v164_v34 = vadd.f32 %v163_v33, %v145_v32 }
 0x11d   :  { %v169_v36 = vmax.f32 %v164_v34, 0.0 }
 0x11f   :  { %v172_v40 = vmul.f32 %v171_v37, %v169_v36 }
 0x121   :  { %v175_v45 = vadd.f32 %v174_v42, %v172_v40 }
 0x123   :  { %v177_v46 = vmax.f32 %v175_v45, 0.0 }
 0x128   :  { %v166_v35 = vpop.f32.mrf.mxu3 }
 0x129   :  { %v167_v38 = vadd.f32 %v166_v35, %v145_v32 }
 0x12b   :  { %v170_v39 = vmax.f32 %v167_v38, 0.0 }
 0x12d   :  { %v173_v41 = vmul.f32 %v171_v37, %v170_v39 }
 0x12f   :  { %v176_v43 = vadd.f32 %v174_v42, %v173_v41 }
 0x131   :  { %v178_v44 = vmax.f32 %v176_v43, 0.0 }
 0x133   :  { %200 = vmatpush.xpose.msra.mxu2 %v178_v44 }
 0x137   :  { %201 = vmatpush.xpose.msra.mxu2 %v177_v46 }
 0x13a   :  { %202 = vmatmul.f32.vlgmr.msra.gmra.mxu2 %v179_v47 }
 0x1bd   :  { %v203_v49 = vpop.f32.mrf.mxu2 }
 0x1be   :  { %v204_v50 = vadd.f32 %v203_v49, %v184_v48 }
 0x1c0   :  { %207 = vst.msk [vmem:[#allocation10] sm:$0xff] %vm206_vm1, %v204_v50 }
 0x1c1   :  { %218 = dma.vmem_to_hbm [thread:$0]  %s214_s6, 128, %s216_s28, [#allocation4]  }
 0x1c2   :  { %381 = dma.done.wait [#allocation4], 128  }
 0x1c3   :  { %382 = vsyncadd [#allocation4], 4294967168 }
 0x1c4   :  { %223 = vsyncpa [#allocation3], 1 }
 0x1c5   :  { %224 = vsyncpa [#allocation6], 1 }
 0x1c6   :  { %225 = vsyncpa [#allocation9], 1 }
 0x1c7   :  { %226 = vsyncpa [#allocation4], 1 }

</bundles_post_ra>
